<compile_context>
chip_gen: v6e
topology: v6e:2x2x1
jax: 0.10.0
libtpu: 0.0.40
codegen_flags: <defaults>
</compile_context>

<pallas_src>
import functools

import jax
import jax.numpy as jnp
from jax import lax
from jax.experimental import pallas as pl
from jax.experimental.pallas import tpu as pltpu


_SUBLANE_MIN = {4: 8, 2: 16, 1: 32}   # sublane alignment by itemsize
_LANES = 128


def _device_kind() -> str:
    try:
        return jax.devices()[0].device_kind.lower()
    except Exception:
        return ""


def _per_core_vmem_bytes() -> int:
    """Per-TensorCore VMEM, clamped by generation (never trust per-chip totals)."""
    kind = _device_kind()
    if "v7" in kind:
        return 64 * 1024 * 1024            # 2 TCs/chip, 64 MiB each
    if "v6" in kind or "v5" in kind or "v4" in kind:
        return 128 * 1024 * 1024
    if "v3" in kind or "v2" in kind:
        return 16 * 1024 * 1024
    return 64 * 1024 * 1024                # unknown / future: conservative


def _has_bf16_vpu() -> bool:
    # v6e / v7x have bf16 VALU; v5e and older do not.
    kind = _device_kind()
    return ("v6" in kind) or ("v7" in kind)


def _round_up(v: int, m: int) -> int:
    return ((v + m - 1) // m) * m


# ----------------------------------------------------------------------------
# Kernels
# ----------------------------------------------------------------------------
def _rmsnorm_kernel(x_ref, w_ref, o_ref, *, eps: float, scale_in_f32: bool):
    # x_ref: (tile_rows, D), w_ref: (1, D), o_ref: (tile_rows, D)
    x = x_ref[...]
    xf = x.astype(jnp.float32)
    ms = jnp.mean(xf * xf, axis=-1, keepdims=True)      # XLU cross-lane reduce (f32)
    inv = lax.rsqrt(ms + eps)                            # EUP
    if scale_in_f32:
        o_ref[...] = (xf * inv * w_ref[...].astype(jnp.float32)).astype(o_ref.dtype)
    else:
        # Native-dtype scaling pass (bf16 VPU on v6e/v7x): halves VALU work and
        # the live intermediate footprint.
        o_ref[...] = (x * inv.astype(x.dtype) * w_ref[...].astype(x.dtype)).astype(o_ref.dtype)


def _rmsnorm_packed_kernel(x_ref, w_ref, s_ref, o_ref, *, eps: float, n_feat: int,
                           scale_in_f32: bool):
    # Lane-packed variant: `128 // n_feat` original rows sit side by side in the
    # 128-lane axis. s_ref is a (128, 128) block-diagonal selector so the
    # per-row sum of squares is a segmented lane reduce done as a tiny MXU matmul.
    x = x_ref[...]
    xf = x.astype(jnp.float32)
    sq = xf * xf
    seg_sum = jnp.dot(sq, s_ref[...], preferred_element_type=jnp.float32)
    inv = lax.rsqrt(seg_sum * (1.0 / n_feat) + eps)
    if scale_in_f32:
        o_ref[...] = (xf * inv * w_ref[...].astype(jnp.float32)).astype(o_ref.dtype)
    else:
        o_ref[...] = (x * inv.astype(x.dtype) * w_ref[...].astype(x.dtype)).astype(o_ref.dtype)


# ----------------------------------------------------------------------------
# Tiling / VMEM sizing
# ----------------------------------------------------------------------------
def _choose_tile_rows(rows: int, d_lanes: int, itemsize: int, sublane: int,
                      vmem_cap: int) -> int:
    row_in_bytes = d_lanes * itemsize
    # ~8 MiB per input buffer, capped at the measured ~512-row streaming sweet spot.
    tile = (8 * 1024 * 1024) // max(row_in_bytes, 1)
    tile = min(tile, 512)
    # VMEM per step: 2x double-buffered in + out (4 * itemsize) plus ~12 B/elem of
    # live f32 intermediates; keep the total under ~60% of per-core VMEM.
    per_row_total = d_lanes * (4 * itemsize + 12)
    tile = min(tile, (vmem_cap * 3 // 5) // max(per_row_total, 1))
    # Keep >= ~8 grid steps so v7x's two TensorCores both get work and the
    # pipeline has enough iterations to hide prologue/epilogue DMAs.
    tile = min(tile, _round_up(pl.cdiv(rows, 8), sublane))
    # Never exceed the (sublane-aligned) row count.
    tile = min(tile, _round_up(rows, sublane))
    tile = max(sublane, (tile // sublane) * sublane)
    return tile


def _vmem_limit_bytes(tile: int, d_lanes: int, itemsize: int, vmem_cap: int) -> int:
    # Recomputed from the FINAL tile (handles caller-supplied tile_rows too).
    needed = (tile * d_lanes * (4 * itemsize + 12)        # buffers + f32 temps
              + 2 * d_lanes * (itemsize + 4)              # resident weight (+cast)
              + (2 << 20))                                # selector / scratch slack
    return int(min(vmem_cap, max(vmem_cap * 3 // 4, needed)))


# ----------------------------------------------------------------------------
# Public wrapper
# ----------------------------------------------------------------------------
def rmsnorm(x: jax.Array, weight: jax.Array, eps: float = 1e-5,
            tile_rows: int | None = None) -> jax.Array:
    """RMSNorm over the last axis of x (..., D); weight shape (D,)."""
    orig_shape = x.shape
    D = int(orig_shape[-1])
    x2d = x.reshape(-1, D)
    rows = int(x2d.shape[0])

    itemsize = jnp.dtype(x.dtype).itemsize
    sublane = _SUBLANE_MIN.get(itemsize, 8)
    vmem_cap = _per_core_vmem_bytes()
    # Only bfloat16 on bf16-capable VPUs (v6e/v7x) uses the native-dtype scaling pass.
    scale_in_f32 = not (jnp.dtype(x.dtype) == jnp.bfloat16 and _has_bf16_vpu())

    # Lane packing for narrow feature dims: fold `pack` rows into the 128-lane
    # axis so loads/stores are full-lane (unmasked) instead of lane-masked.
    pack = 1
    if D < _LANES and _LANES % D == 0 and rows % (_LANES // D) == 0:
        pack = _LANES // D

    if pack > 1:
        rows_k = rows // pack
        d_lanes = D * pack                       # == 128
        x_in = x2d.reshape(rows_k, d_lanes)
        w_in = jnp.tile(weight.reshape(1, D), (1, pack))
        seg = jnp.arange(_LANES, dtype=jnp.int32) // D
        selector = (seg[:, None] == seg[None, :]).astype(jnp.float32)
        kernel = functools.partial(_rmsnorm_packed_kernel, eps=float(eps),
                                   n_feat=D, scale_in_f32=scale_in_f32)
    else:
        rows_k = rows
        d_lanes = D
        x_in = x2d
        w_in = weight.reshape(1, D)
        selector = None
        kernel = functools.partial(_rmsnorm_kernel, eps=float(eps),
                                   scale_in_f32=scale_in_f32)

    if tile_rows is None:
        tile = _choose_tile_rows(rows_k, d_lanes, itemsize, sublane, vmem_cap)
    else:
        tile = max(sublane, (int(tile_rows) // sublane) * sublane)
    vmem_limit = _vmem_limit_bytes(tile, d_lanes, itemsize, vmem_cap)

    # Ragged last block (rows_k % tile != 0) is handled by Pallas: no host-side
    # pad/slice pass over the tensor.
    grid_rows = pl.cdiv(rows_k, tile)

    in_specs = [
        pl.BlockSpec((tile, d_lanes), lambda i: (i, 0)),
        pl.BlockSpec((1, d_lanes), lambda i: (0, 0)),        # resident weight block
    ]
    operands = [x_in, w_in]
    if pack > 1:
        in_specs.append(pl.BlockSpec((_LANES, _LANES), lambda i: (0, 0)))
        operands.append(selector)

    w_itemsize = jnp.dtype(weight.dtype).itemsize
    flops = 4 * rows * D + (2 * rows_k * d_lanes * d_lanes if pack > 1 else 0)
    bytes_accessed = rows * D * 2 * itemsize + D * pack * w_itemsize
    if pack > 1:
        bytes_accessed += _LANES * _LANES * 4
    cost = pl.CostEstimate(flops=int(flops), transcendentals=int(rows),
                           bytes_accessed=int(bytes_accessed))

    out2d = pl.pallas_call(
        kernel,
        out_shape=jax.ShapeDtypeStruct((rows_k, d_lanes), x.dtype),
        grid_spec=pltpu.PrefetchScalarGridSpec(
            num_scalar_prefetch=0,
            grid=(grid_rows,),
            in_specs=in_specs,
            out_specs=pl.BlockSpec((tile, d_lanes), lambda i: (i, 0)),
        ),
        compiler_params=pltpu.CompilerParams(
            dimension_semantics=("parallel",),     # megacore sharding on v7x
            vmem_limit_bytes=vmem_limit,
        ),
        cost_estimate=cost,
    )(*operands)

    return out2d.reshape(orig_shape)


def rmsnorm_ref(x, weight, eps=1e-5):
    xf = x.astype(jnp.float32)
    ms = jnp.mean(xf * xf, axis=-1, keepdims=True)
    return (weight.astype(jnp.float32) * xf * lax.rsqrt(ms + eps)).astype(x.dtype)


if __name__ == "__main__":
    eps = 1e-5  # matches the PyTorch module default
    key = jax.random.PRNGKey(0)
    k1, k2, k3 = jax.random.split(key, 3)

    # Case 1: (batch, seq_len, features) per the module; D=32 exercises the
    # lane-packing path (rows=16 divisible by 128//32=4).
    batch, seq, hidden = 2, 8, 32
    x = jax.random.normal(k1, (batch, seq, hidden), dtype=jnp.float32)
    weight = jnp.ones((hidden,), dtype=jnp.float32)   # nn.Parameter(torch.ones(size))
    out = jax.block_until_ready(rmsnorm(x, weight, eps=eps))
    ref = rmsnorm_ref(x, weight, eps=eps)
    assert out.shape == x.shape
    assert jnp.allclose(out, ref, atol=1e-5, rtol=1e-5), "mismatch vs reference (case 1)"

    # Case 2: ragged row count (15 rows) — exercises the in-kernel ragged-last-block
    # path (no host-side pad/slice) without lane packing.
    x2 = jax.random.normal(k2, (3, 5, hidden), dtype=jnp.float32)
    out2 = jax.block_until_ready(rmsnorm(x2, weight, eps=eps))
    ref2 = rmsnorm_ref(x2, weight, eps=eps)
    assert out2.shape == x2.shape
    assert jnp.allclose(out2, ref2, atol=1e-5, rtol=1e-5), "mismatch vs reference (case 2)"

    # Case 3: bf16 input — native-dtype scaling on v6e/v7x, f32 path on v5e.
    hidden3 = 256
    x3 = jax.random.normal(k3, (2, 8, hidden3), dtype=jnp.bfloat16)
    w3 = jnp.ones((hidden3,), dtype=jnp.float32)
    out3 = jax.block_until_ready(rmsnorm(x3, w3, eps=eps))
    ref3 = rmsnorm_ref(x3, w3, eps=eps)
    assert out3.shape == x3.shape
    assert jnp.allclose(out3.astype(jnp.float32), ref3.astype(jnp.float32),
                        atol=5e-2, rtol=5e-2), "mismatch vs reference (case 3)"

    print("KERNEL_OK")
</pallas_src>

<mosaic_0001>
module attributes {stable_mosaic.version = 11 : i64} {
  func.func @_rmsnorm_packed_kernel(%arg0: i32, %arg1: memref<8x128xf32, #tpu.memory_space<vmem>>, %arg2: memref<1x128xf32, #tpu.memory_space<vmem>>, %arg3: memref<128x128xf32, #tpu.memory_space<vmem>>, %arg4: memref<8x128xf32, #tpu.memory_space<vmem>>) attributes {dimension_semantics = [#tpu.dimension_semantics<parallel>], iteration_bounds = array<i64: 1>, scalar_prefetch = 0 : i64, scratch_operands = 0 : i64, tpu.core_type = #tpu.core_type<tc>, window_params = [{transform_indices = @transform_0, window_bounds = array<i64: 8, 128>}, {pipeline_mode = #tpu.pipeline_mode<synchronous>, transform_indices = @transform_1, window_bounds = array<i64: 1, 128>}, {pipeline_mode = #tpu.pipeline_mode<synchronous>, transform_indices = @transform_2, window_bounds = array<i64: 128, 128>}, {transform_indices = @transform_3, window_bounds = array<i64: 8, 128>}]} {
    %c0 = arith.constant 0 : index
    %c0_0 = arith.constant 0 : index
    %0 = vector.load %arg1[%c0, %c0_0] : memref<8x128xf32, #tpu.memory_space<vmem>>, vector<8x128xf32>
    %1 = arith.mulf %0, %0 : vector<8x128xf32>
    %c0_1 = arith.constant 0 : index
    %c0_2 = arith.constant 0 : index
    %2 = vector.load %arg3[%c0_1, %c0_2] : memref<128x128xf32, #tpu.memory_space<vmem>>, vector<128x128xf32>
    %cst = arith.constant dense<0.000000e+00> : vector<8x128xf32>
    %3 = tpu.matmul %1, %2, %cst {dimension_numbers = #tpu.dot_dimension_numbers<[1], [0], [0], [1], [0, 0, 1, 1], [], []>} : vector<8x128xf32>, vector<128x128xf32>, vector<8x128xf32> -> vector<8x128xf32>
    %cst_3 = arith.constant 3.125000e-02 : f32
    %4 = vector.broadcast %cst_3 : f32 to vector<8x128xf32>
    %5 = arith.mulf %3, %4 : vector<8x128xf32>
    %cst_4 = arith.constant 9.99999974E-6 : f32
    %6 = vector.broadcast %cst_4 : f32 to vector<8x128xf32>
    %7 = arith.addf %5, %6 : vector<8x128xf32>
    %8 = math.rsqrt %7 : vector<8x128xf32>
    %9 = arith.mulf %0, %8 : vector<8x128xf32>
    %c0_5 = arith.constant 0 : index
    %c0_6 = arith.constant 0 : index
    %10 = vector.load %arg2[%c0_5, %c0_6] : memref<1x128xf32, #tpu.memory_space<vmem>>, vector<1x128xf32>
    %11 = vector.broadcast %10 : vector<1x128xf32> to vector<8x128xf32>
    %12 = arith.mulf %9, %11 : vector<8x128xf32>
    %c0_7 = arith.constant 0 : index
    %c0_8 = arith.constant 0 : index
    %13 = vector.load %arg4[%c0_7, %c0_8] : memref<8x128xf32, #tpu.memory_space<vmem>>, vector<8x128xf32>
    tpu.vector_store %arg4[%c0_7, %c0_8], %12 {strides = array<i32>} : memref<8x128xf32, #tpu.memory_space<vmem>>, vector<8x128xf32>,
    return
  }
  func.func @transform_0(%arg0: i32) -> (i32, i32) {
    %c0_i32 = arith.constant 0 : i32
    %c0_i32_0 = arith.constant 0 : i32
    return %arg0, %c0_i32 : i32, i32
  }
  func.func @transform_1(%arg0: i32) -> (i32, i32) {
    %c0_i32 = arith.constant 0 : i32
    %c0_i32_0 = arith.constant 0 : i32
    %c0_i32_1 = arith.constant 0 : i32
    return %c0_i32, %c0_i32_0 : i32, i32
  }
  func.func @transform_2(%arg0: i32) -> (i32, i32) {
    %c0_i32 = arith.constant 0 : i32
    %c0_i32_0 = arith.constant 0 : i32
    %c0_i32_1 = arith.constant 0 : i32
    return %c0_i32, %c0_i32_0 : i32, i32
  }
  func.func @transform_3(%arg0: i32) -> (i32, i32) {
    %c0_i32 = arith.constant 0 : i32
    %c0_i32_0 = arith.constant 0 : i32
    return %arg0, %c0_i32 : i32, i32
  }
}

</mosaic_0001>

<bundles_post_ra>
// kernel: tpu_custom_call.1
= control target key start
LH: loop header
LB: loop body
LE: loop exit
PB: predicated region body
PF: predicated region fallthrough
CT: control target
= control target key end

     0   :  { %8 = vsyncpa [#allocation3], 0  ;;  %s339_s0 = inlined_call_operand.hbm [shape: f32[4,128], index: 0, kind: input, shape index: {}]   ;;  %s340_s1 = inlined_call_operand.vmem [shape: f32[1,128], index: 1, kind: input, shape index: {}]   ;;  %s341_s2 = inlined_call_operand.hbm [shape: f32[128,128], index: 2, kind: input, shape index: {}]   ;;  %s342_s3 = inlined_call_operand.hbm [shape: f32[4,128], index: 3, kind: output, shape index: {}]  }
   0x1   :  { %9 = vsyncpa [#allocation6], 0 }
   0x2   :  { %10 = vsyncpa [#allocation4], 0 }
   0x3   :  { %15 = vsyncadd [#allocation3], 64  ;;  %s292_s12 = smov [#allocation2]  }
   0x4   :  { %s16_s13 = sshll.u32 %s292_s12, 4  ;;  %s17_s13 = int_to_ptr.vmem [resolvable:$true] %s16_s13 }
   0x5   :  { %s234_s14 = scalar_lea.vmem %s17_s13, 64  ;;  %s238_s15 = scalar_lea.vmem %s17_s13, 128 }
   0x6   :  { %p235_p0 = scmp.ne.s32.totalorder %s17_s13, %s234_s14  ;;  %p239_p1 = scmp.lt.s32.totalorder %s17_s13, %s17_s13 }
   0x7   :  { %p240_p2 = scmp.lt.s32.totalorder %s238_s15, %s234_s14 }
   0x9   :  { %p241_p3 = por %p240_p2, %p239_p1 }
   0xb   :  { %p242_p4 = pnand %p241_p3, %p235_p0 }
   0xd   :  { %245 = shalt.err (!%p242_p4)
}
   0xe   :  { %s293_s16 = smov 64   ;;  %s294_s17 = smov 4  }
   0xf   :  { %22 = dma.hbm_to_vmem [thread:$0]  %s339_s0, 64, %s17_s13, [#allocation3], %s293_s16, %s293_s16, %s294_s17  }
  0x10   :  { %s295_s20 = smov [#allocation5]  }
  0x11   :  { %s30_s21 = sshll.u32 %s295_s20, 4  ;;  %s31_s21 = int_to_ptr.vmem [resolvable:$true] %s30_s21 }
  0x12   :  { %s254_s22 = scalar_lea.vmem %s31_s21, 2048  ;;  %p259_p6 = scmp.lt.s32.totalorder %s31_s21, %s31_s21 }
  0x13   :  { %p255_p5 = scmp.ne.s32.totalorder %s31_s21, %s254_s22  ;;  %p260_p7 = scmp.lt.s32.totalorder %s254_s22, %s254_s22 }
  0x15   :  { %p261_p8 = por %p260_p7, %p259_p6 }
  0x17   :  { %p262_p9 = pnand %p261_p8, %p255_p5 }
  0x19   :  { %265 = shalt.err (!%p262_p9)
}
  0x1a   :  { %s296_s23 = smov 128   ;;  %s297_s24 = smov 8  }
  0x1b   :  { %36 = dma.hbm_to_vmem [thread:$0]  %s341_s2, 2048, %s31_s21, [#allocation6], %s296_s23, %s296_s23, %s297_s24  }
  0x1c   :  { %286 = dma.done.wait [#allocation3], 128  }
  0x1d   :  { %287 = vsyncadd [#allocation3], 4294967168 }
  0x1e   :  { %288 = dma.done.wait [#allocation6], 2048  }
  0x1f   :  { %289 = vsyncadd [#allocation6], 4294965248  ;;  %v298_v0 = vmov 0.0   ;;  %vm299_vm0 = vmmov 0   ;;  %v60_v1 = vld [vmem:[#allocation5 + $0x78] sm:$0xff]  ;;  %v59_v2 = vld [vmem:[#allocation5 + $0x70] sm:$0xff] }
  0x20   :  { %180 = vmatprep.subr.mxu0 %v298_v0  ;;  %212 = vmatprep.mubr.msk.f32.mxu0 %vm299_vm0, %v298_v0  ;;  %v58_v3 = vld [vmem:[#allocation5 + $0x68] sm:$0xff]  ;;  %v57_v4 = vld [vmem:[#allocation5 + $0x60] sm:$0xff]  ;;  %v56_v5 = vld [vmem:[#allocation5 + $0x58] sm:$0xff] }
  0x21   :  { %181 = vmatpush3.msra.mxu0 %v60_v1  ;;  %v55_v6 = vld [vmem:[#allocation5 + $0x50] sm:$0xff]  ;;  %v54_v7 = vld [vmem:[#allocation5 + $0x48] sm:$0xff]  ;;  %v53_v8 = vld [vmem:[#allocation5 + $0x40] sm:$0xff] }
  0x22   :  { %182 = vmatprep.subr.mxu0 %v298_v0  ;;  %v52_v9 = vld [vmem:[#allocation5 + $0x38] sm:$0xff]  ;;  %v51_v10 = vld [vmem:[#allocation5 + $0x30] sm:$0xff]  ;;  %v50_v11 = vld [vmem:[#allocation5 + $0x28] sm:$0xff] }
  0x23   :  { %183 = vmatpush3.msra.mxu0 %v59_v2  ;;  %v49_v12 = vld [vmem:[#allocation5 + $0x20] sm:$0xff]  ;;  %v48_v13 = vld [vmem:[#allocation5 + $0x18] sm:$0xff]  ;;  %v47_v14 = vld [vmem:[#allocation5 + $0x10] sm:$0xff] }
  0x24   :  { %184 = vmatprep.subr.mxu0 %v298_v0  ;;  %v43_v15 = vld [vmem:[#allocation2] sm:$0xff]  ;;  %v46_v16 = vld [vmem:[#allocation5 + $0x8] sm:$0xff]  ;;  %v45_v17 = vld [vmem:[#allocation5] sm:$0xff] }
  0x25   :  { %185 = vmatpush3.msra.mxu0 %v58_v3  ;;  %v44_v18 = vmul.f32 %v43_v15, %v43_v15  ;;  %v162_v24 = vld [vmem:[%s340_s1] ss:$0 sm:$0xff] }
  0x26   :  { %186 = vmatprep.subr.mxu0 %v298_v0 }
  0x27   :  { %187 = vmatpush3.msra.mxu0 %v57_v4 }
  0x28   :  { %188 = vmatprep.subr.mxu0 %v298_v0 }
  0x29   :  { %189 = vmatpush3.msra.mxu0 %v56_v5 }
  0x2a   :  { %190 = vmatprep.subr.mxu0 %v298_v0 }
  0x2b   :  { %191 = vmatpush3.msra.mxu0 %v55_v6 }
  0x2c   :  { %192 = vmatprep.subr.mxu0 %v298_v0 }
  0x2d   :  { %193 = vmatpush3.msra.mxu0 %v54_v7 }
  0x2e   :  { %194 = vmatprep.subr.mxu0 %v298_v0 }
  0x2f   :  { %195 = vmatpush3.msra.mxu0 %v53_v8 }
  0x30   :  { %196 = vmatprep.subr.mxu0 %v298_v0 }
  0x31   :  { %197 = vmatpush3.msra.mxu0 %v52_v9 }
  0x32   :  { %198 = vmatprep.subr.mxu0 %v298_v0 }
  0x33   :  { %199 = vmatpush3.msra.mxu0 %v51_v10 }
  0x34   :  { %200 = vmatprep.subr.mxu0 %v298_v0 }
  0x35   :  { %201 = vmatpush3.msra.mxu0 %v50_v11 }
  0x36   :  { %202 = vmatprep.subr.mxu0 %v298_v0 }
  0x37   :  { %203 = vmatpush3.msra.mxu0 %v49_v12 }
  0x38   :  { %204 = vmatprep.subr.mxu0 %v298_v0 }
  0x39   :  { %205 = vmatpush3.msra.mxu0 %v48_v13 }
  0x3a   :  { %206 = vmatprep.subr.mxu0 %v298_v0 }
  0x3b   :  { %207 = vmatpush3.msra.mxu0 %v47_v14 }
  0x3c   :  { %208 = vmatprep.subr.mxu0 %v298_v0 }
  0x3d   :  { %209 = vmatpush3.msra.mxu0 %v46_v16 }
  0x3e   :  { %210 = vmatprep.subr.mxu0 %v298_v0 }
  0x3f   :  { %211 = vmatpush3.msra.mxu0 %v45_v17 }
  0x40   :  { %213 = vmatmul.mubr.f32.vlgmr.msra.gmra.mxu0 %v44_v18 }
 0x100   :  { %v127_v19 = vpop.f32.mrf.mxu0 }
 0x101   :  { %v131_v20 = vmul.f32 0.03125, %v127_v19 }
 0x102   :  { %v214_v21 = vpop.f32.mrf.mxu0 }
 0x103   :  { %v132_v22 = vadd.f32 1e-05, %v131_v20 }
 0x105   :  { %224 = vrsqrt.f32 %v132_v22 }
 0x112   :  { %v225_v23 = vpop.eup %224 }
 0x113   :  { %v134_v25 = vmul.f32 %v225_v23, %v43_v15 }
 0x115   :  { %v142_v26 = vmul.f32 %v162_v24, %v134_v25 }
 0x117   :  { %143 = vst [vmem:[#allocation7] sm:$0xff] %v142_v26 }
 0x118   :  { %148 = vsyncadd [#allocation4], 64  ;;  %s300_s27 = smov [#allocation7]  }
 0x119   :  { %s149_s28 = sshll.u32 %s300_s27, 4  ;;  %s150_s28 = int_to_ptr.vmem [resolvable:$true] %s149_s28 }
 0x11a   :  { %s266_s29 = scalar_lea.vmem %s150_s28, 64  ;;  %s270_s30 = scalar_lea.vmem %s150_s28, 128 }
 0x11b   :  { %p267_p10 = scmp.ne.s32.totalorder %s150_s28, %s266_s29  ;;  %p271_p11 = scmp.lt.s32.totalorder %s150_s28, %s150_s28 }
 0x11c   :  { %p272_p12 = scmp.lt.s32.totalorder %s270_s30, %s266_s29 }
 0x11e   :  { %p273_p13 = por %p272_p12, %p271_p11 }
 0x120   :  { %p274_p0 = pnand %p273_p13, %p267_p10 }
 0x122   :  { %277 = shalt.err (!%p274_p0)
}
 0x123   :  { %155 = dma.vmem_to_hbm [thread:$0]  %s150_s28, 64, %s342_s3, [#allocation4], %s293_s16, %s293_s16, %s294_s17  }
 0x124   :  { %290 = dma.done.wait [#allocation4], 128  }
 0x125   :  { %291 = vsyncadd [#allocation4], 4294967168 }
 0x126   :  { %159 = vsyncpa [#allocation3], 1 }
 0x127   :  { %160 = vsyncpa [#allocation6], 1 }
 0x128   :  { %161 = vsyncpa [#allocation4], 1 }

</bundles_post_ra>
